<compile_context>
chip_gen: v7x
topology: tpu7x:2x2x1
jax: 0.10.0
libtpu: 0.0.40
codegen_flags: <defaults>
</compile_context>

<pallas_src>
import jax
import jax.numpy as jnp
from jax.experimental import pallas as pl
from jax.experimental.pallas import tpu as pltpu


LANE = 128  # vreg lane width


def _round_up(x, m):
    return ((x + m - 1) // m) * m


def _mlp_kernel(x_ref,
                w1_ref, b1_ref,
                w2_ref, b2_ref,
                w3_ref, b3_ref,
                w4_ref, b4_ref,
                out_ref):
    """One batch tile of the fused 4-layer MLP.

    x_ref:   (TB, in_dim)        VMEM tile of the batch
    w*_ref:  (*, 128-padded)     whole weights, VMEM-resident across the grid
    b*_ref:  (1, 128-padded)     whole biases,  VMEM-resident across the grid
    out_ref: (TB, out_pad=128k)  lane-dense output slab
    """
    x = x_ref[...]  # already f32

    # Load biases once.
    b1 = b1_ref[...]
    b2 = b2_ref[...]
    b3 = b3_ref[...]
    b4 = b4_ref[...]

    h = jnp.dot(x, w1_ref[...], preferred_element_type=jnp.float32) + b1
    h = jnp.maximum(h, 0.0)

    h = jnp.dot(h, w2_ref[...], preferred_element_type=jnp.float32) + b2
    h = jnp.maximum(h, 0.0)

    h = jnp.dot(h, w3_ref[...], preferred_element_type=jnp.float32) + b3
    h = jnp.maximum(h, 0.0)

    out = jnp.dot(h, w4_ref[...], preferred_element_type=jnp.float32) + b4
    out_ref[...] = out.astype(out_ref.dtype)


def _pad2d(a, rows, cols):
    """Zero-pad a 2-D array up to (rows, cols)."""
    r, c = a.shape
    return jnp.pad(a, ((0, rows - r), (0, cols - c)))


def feed_forward_nn(obs, params, *, max_batch_tile=1024):
    """obs: (B, in_dim) float32. params: w1..w4 (in,out) f32, b1..b4 (1,out) f32.

    Computes relu(relu(relu(obs@w1+b1)@w2+b2)@w3+b3)@w4+b4, identical to the
    PyTorch FeedForwardNN forward pass.
    """
    obs = jnp.asarray(obs, dtype=jnp.float32)
    B, in_dim = obs.shape
    hidden = params["w1"].shape[1]          # 64 in the reference module
    out_dim = params["w4"].shape[1]

    # Lane-aligned (128) padded sizes for the hidden and output dims.
    hid_p = _round_up(hidden, LANE)
    out_p = _round_up(out_dim, LANE)

    # Zero-pad weights/biases: padded hidden units get zero weight in & out and
    # zero bias, so they contribute nothing -> forward semantics unchanged.
    w1 = _pad2d(params["w1"], in_dim, hid_p)
    w2 = _pad2d(params["w2"], hid_p, hid_p)
    w3 = _pad2d(params["w3"], hid_p, hid_p)
    w4 = _pad2d(params["w4"], hid_p, out_p)
    b1 = _pad2d(params["b1"], 1, hid_p)
    b2 = _pad2d(params["b2"], 1, hid_p)
    b3 = _pad2d(params["b3"], 1, hid_p)
    b4 = _pad2d(params["b4"], 1, out_p)

    # Batch tile: multiple of 8 (sublane), capped so double-buffered tiles stay
    # tiny compared with even v7x's 64 MiB VMEM.
    tb = min(max_batch_tile, _round_up(B, 8))
    b_pad = _round_up(B, tb)
    if b_pad != B:
        obs = jnp.pad(obs, ((0, b_pad - B), (0, 0)))
    num_tiles = b_pad // tb

    # obs/out are tiled over the batch grid; weights & biases are whole-array
    # VMEM-resident operands (DMA'd once, reused every grid step).
    resident = pl.BlockSpec(memory_space=pltpu.MemorySpace.VMEM)
    in_specs = [
        pl.BlockSpec((tb, in_dim), lambda i: (i, 0)),   # obs tile
        resident, resident,                              # w1, b1
        resident, resident,                              # w2, b2
        resident, resident,                              # w3, b3
        resident, resident,                              # w4, b4
    ]
    out_spec = pl.BlockSpec((tb, out_p), lambda i: (i, 0))

    out_padded = pl.pallas_call(
        _mlp_kernel,
        out_shape=jax.ShapeDtypeStruct((b_pad, out_p), jnp.float32),
        grid=(num_tiles,),
        in_specs=in_specs,
        out_specs=out_spec,
        compiler_params=pltpu.CompilerParams(
            dimension_semantics=("parallel",),
            vmem_limit_bytes=32 * 1024 * 1024,
        ),
    )(obs, w1, b1, w2, b2, w3, b3, w4, b4)

    # Slice away batch padding and the lane-padding of the output dimension.
    return out_padded[:B, :out_dim]


def init_params(key, in_dim, out_dim, hidden=64):
    """Deterministic init mimicking torch.nn.Linear default:
    U(-1/sqrt(fan_in), 1/sqrt(fan_in)) for both weight and bias."""
    dims = [(in_dim, hidden), (hidden, hidden), (hidden, hidden), (hidden, out_dim)]
    params = {}
    keys = jax.random.split(key, 2 * len(dims))
    for i, (fan_in, fan_out) in enumerate(dims):
        bound = 1.0 / jnp.sqrt(jnp.float32(fan_in))
        w = jax.random.uniform(keys[2 * i], (fan_in, fan_out),
                               minval=-bound, maxval=bound, dtype=jnp.float32)
        b = jax.random.uniform(keys[2 * i + 1], (1, fan_out),
                               minval=-bound, maxval=bound, dtype=jnp.float32)
        params[f"w{i + 1}"] = w
        params[f"b{i + 1}"] = b
    return params


if __name__ == "__main__":
    key = jax.random.PRNGKey(0)
    k_obs, k_params = jax.random.split(key)

    # e.g. PPO actor: obs_dim=8, act_dim=4 (batch kept small for the smoke test;
    # the kernel tiles/pipelines automatically for large rollout batches).
    batch, in_dim, out_dim = 8, 8, 4
    obs = jax.random.normal(k_obs, (batch, in_dim), dtype=jnp.float32)
    params = init_params(k_params, in_dim, out_dim)

    out = feed_forward_nn(obs, params)
    jax.block_until_ready(out)

    # Pure-JAX reference check of the same forward pass (unpadded params).
    h = jnp.maximum(obs @ params["w1"] + params["b1"], 0.0)
    h = jnp.maximum(h @ params["w2"] + params["b2"], 0.0)
    h = jnp.maximum(h @ params["w3"] + params["b3"], 0.0)
    ref = h @ params["w4"] + params["b4"]
    assert out.shape == (batch, out_dim)
    assert jnp.allclose(out, ref, atol=1e-5, rtol=1e-5)

    # Also exercise a larger, non-tile-aligned batch to hit the grid path.
    big_obs = jax.random.normal(k_obs, (1000, in_dim), dtype=jnp.float32)
    big_out = feed_forward_nn(big_obs, params)
    jax.block_until_ready(big_out)
    hb = jnp.maximum(big_obs @ params["w1"] + params["b1"], 0.0)
    hb = jnp.maximum(hb @ params["w2"] + params["b2"], 0.0)
    hb = jnp.maximum(hb @ params["w3"] + params["b3"], 0.0)
    big_ref = hb @ params["w4"] + params["b4"]
    assert big_out.shape == (1000, out_dim)
    assert jnp.allclose(big_out, big_ref, atol=1e-4, rtol=1e-4)

    print("KERNEL_OK")
</pallas_src>

<mosaic_0001>
module attributes {stable_mosaic.version = 11 : i64} {
  func.func @_mlp_kernel(%arg0: i32, %arg1: memref<8x8xf32, #tpu.memory_space<vmem>>, %arg2: memref<8x128xf32, #tpu.memory_space<vmem>>, %arg3: memref<1x128xf32, #tpu.memory_space<vmem>>, %arg4: memref<128x128xf32, #tpu.memory_space<vmem>>, %arg5: memref<1x128xf32, #tpu.memory_space<vmem>>, %arg6: memref<128x128xf32, #tpu.memory_space<vmem>>, %arg7: memref<1x128xf32, #tpu.memory_space<vmem>>, %arg8: memref<128x128xf32, #tpu.memory_space<vmem>>, %arg9: memref<1x128xf32, #tpu.memory_space<vmem>>, %arg10: memref<8x128xf32, #tpu.memory_space<vmem>>) attributes {dimension_semantics = [#tpu.dimension_semantics<parallel>], iteration_bounds = array<i64: 1>, scalar_prefetch = 0 : i64, scratch_operands = 0 : i64, tpu.core_type = #tpu.core_type<tc>, window_params = [{transform_indices = @transform_0, window_bounds = array<i64: 8, 8>}, {pipeline_mode = #tpu.pipeline_mode<synchronous>, transform_indices = @transform_1, window_bounds = array<i64: 8, 128>}, {pipeline_mode = #tpu.pipeline_mode<synchronous>, transform_indices = @transform_2, window_bounds = array<i64: 1, 128>}, {pipeline_mode = #tpu.pipeline_mode<synchronous>, transform_indices = @transform_3, window_bounds = array<i64: 128, 128>}, {pipeline_mode = #tpu.pipeline_mode<synchronous>, transform_indices = @transform_4, window_bounds = array<i64: 1, 128>}, {pipeline_mode = #tpu.pipeline_mode<synchronous>, transform_indices = @transform_5, window_bounds = array<i64: 128, 128>}, {pipeline_mode = #tpu.pipeline_mode<synchronous>, transform_indices = @transform_6, window_bounds = array<i64: 1, 128>}, {pipeline_mode = #tpu.pipeline_mode<synchronous>, transform_indices = @transform_7, window_bounds = array<i64: 128, 128>}, {pipeline_mode = #tpu.pipeline_mode<synchronous>, transform_indices = @transform_8, window_bounds = array<i64: 1, 128>}, {transform_indices = @transform_9, window_bounds = array<i64: 8, 128>}]} {
    %c0 = arith.constant 0 : index
    %c0_0 = arith.constant 0 : index
    %0 = vector.load %arg1[%c0, %c0_0] : memref<8x8xf32, #tpu.memory_space<vmem>>, vector<8x8xf32>
    %c0_1 = arith.constant 0 : index
    %c0_2 = arith.constant 0 : index
    %1 = vector.load %arg3[%c0_1, %c0_2] : memref<1x128xf32, #tpu.memory_space<vmem>>, vector<1x128xf32>
    %c0_3 = arith.constant 0 : index
    %c0_4 = arith.constant 0 : index
    %2 = vector.load %arg5[%c0_3, %c0_4] : memref<1x128xf32, #tpu.memory_space<vmem>>, vector<1x128xf32>
    %c0_5 = arith.constant 0 : index
    %c0_6 = arith.constant 0 : index
    %3 = vector.load %arg7[%c0_5, %c0_6] : memref<1x128xf32, #tpu.memory_space<vmem>>, vector<1x128xf32>
    %c0_7 = arith.constant 0 : index
    %c0_8 = arith.constant 0 : index
    %4 = vector.load %arg9[%c0_7, %c0_8] : memref<1x128xf32, #tpu.memory_space<vmem>>, vector<1x128xf32>
    %c0_9 = arith.constant 0 : index
    %c0_10 = arith.constant 0 : index
    %5 = vector.load %arg2[%c0_9, %c0_10] : memref<8x128xf32, #tpu.memory_space<vmem>>, vector<8x128xf32>
    %cst = arith.constant dense<0.000000e+00> : vector<8x128xf32>
    %6 = tpu.matmul %0, %5, %cst {dimension_numbers = #tpu.dot_dimension_numbers<[1], [0], [0], [1], [0, 0, 1, 1], [], []>} : vector<8x8xf32>, vector<8x128xf32>, vector<8x128xf32> -> vector<8x128xf32>
    %7 = vector.broadcast %1 : vector<1x128xf32> to vector<8x128xf32>
    %8 = arith.addf %6, %7 : vector<8x128xf32>
    %cst_11 = arith.constant 0.000000e+00 : f32
    %9 = vector.broadcast %cst_11 : f32 to vector<8x128xf32>
    %10 = arith.maximumf %8, %9 : vector<8x128xf32>
    %c0_12 = arith.constant 0 : index
    %c0_13 = arith.constant 0 : index
    %11 = vector.load %arg4[%c0_12, %c0_13] : memref<128x128xf32, #tpu.memory_space<vmem>>, vector<128x128xf32>
    %cst_14 = arith.constant dense<0.000000e+00> : vector<8x128xf32>
    %12 = tpu.matmul %10, %11, %cst_14 {dimension_numbers = #tpu.dot_dimension_numbers<[1], [0], [0], [1], [0, 0, 1, 1], [], []>} : vector<8x128xf32>, vector<128x128xf32>, vector<8x128xf32> -> vector<8x128xf32>
    %13 = vector.broadcast %2 : vector<1x128xf32> to vector<8x128xf32>
    %14 = arith.addf %12, %13 : vector<8x128xf32>
    %cst_15 = arith.constant 0.000000e+00 : f32
    %15 = vector.broadcast %cst_15 : f32 to vector<8x128xf32>
    %16 = arith.maximumf %14, %15 : vector<8x128xf32>
    %c0_16 = arith.constant 0 : index
    %c0_17 = arith.constant 0 : index
    %17 = vector.load %arg6[%c0_16, %c0_17] : memref<128x128xf32, #tpu.memory_space<vmem>>, vector<128x128xf32>
    %cst_18 = arith.constant dense<0.000000e+00> : vector<8x128xf32>
    %18 = tpu.matmul %16, %17, %cst_18 {dimension_numbers = #tpu.dot_dimension_numbers<[1], [0], [0], [1], [0, 0, 1, 1], [], []>} : vector<8x128xf32>, vector<128x128xf32>, vector<8x128xf32> -> vector<8x128xf32>
    %19 = vector.broadcast %3 : vector<1x128xf32> to vector<8x128xf32>
    %20 = arith.addf %18, %19 : vector<8x128xf32>
    %cst_19 = arith.constant 0.000000e+00 : f32
    %21 = vector.broadcast %cst_19 : f32 to vector<8x128xf32>
    %22 = arith.maximumf %20, %21 : vector<8x128xf32>
    %c0_20 = arith.constant 0 : index
    %c0_21 = arith.constant 0 : index
    %23 = vector.load %arg8[%c0_20, %c0_21] : memref<128x128xf32, #tpu.memory_space<vmem>>, vector<128x128xf32>
    %cst_22 = arith.constant dense<0.000000e+00> : vector<8x128xf32>
    %24 = tpu.matmul %22, %23, %cst_22 {dimension_numbers = #tpu.dot_dimension_numbers<[1], [0], [0], [1], [0, 0, 1, 1], [], []>} : vector<8x128xf32>, vector<128x128xf32>, vector<8x128xf32> -> vector<8x128xf32>
    %25 = vector.broadcast %4 : vector<1x128xf32> to vector<8x128xf32>
    %26 = arith.addf %24, %25 : vector<8x128xf32>
    %c0_23 = arith.constant 0 : index
    %c0_24 = arith.constant 0 : index
    %27 = vector.load %arg10[%c0_23, %c0_24] : memref<8x128xf32, #tpu.memory_space<vmem>>, vector<8x128xf32>
    tpu.vector_store %arg10[%c0_23, %c0_24], %26 {strides = array<i32>} : memref<8x128xf32, #tpu.memory_space<vmem>>, vector<8x128xf32>,
    return
  }
  func.func @transform_0(%arg0: i32) -> (i32, i32) {
    %c0_i32 = arith.constant 0 : i32
    %c0_i32_0 = arith.constant 0 : i32
    return %arg0, %c0_i32 : i32, i32
  }
  func.func @transform_1(%arg0: i32) -> (i32, i32) {
    %c0_i32 = arith.constant 0 : i32
    %c0_i32_0 = arith.constant 0 : i32
    %c0_i32_1 = arith.constant 0 : i32
    return %c0_i32, %c0_i32_0 : i32, i32
  }
  func.func @transform_2(%arg0: i32) -> (i32, i32) {
    %c0_i32 = arith.constant 0 : i32
    %c0_i32_0 = arith.constant 0 : i32
    %c0_i32_1 = arith.constant 0 : i32
    return %c0_i32, %c0_i32_0 : i32, i32
  }
  func.func @transform_3(%arg0: i32) -> (i32, i32) {
    %c0_i32 = arith.constant 0 : i32
    %c0_i32_0 = arith.constant 0 : i32
    %c0_i32_1 = arith.constant 0 : i32
    return %c0_i32, %c0_i32_0 : i32, i32
  }
  func.func @transform_4(%arg0: i32) -> (i32, i32) {
    %c0_i32 = arith.constant 0 : i32
    %c0_i32_0 = arith.constant 0 : i32
    %c0_i32_1 = arith.constant 0 : i32
    return %c0_i32, %c0_i32_0 : i32, i32
  }
  func.func @transform_5(%arg0: i32) -> (i32, i32) {
    %c0_i32 = arith.constant 0 : i32
    %c0_i32_0 = arith.constant 0 : i32
    %c0_i32_1 = arith.constant 0 : i32
    return %c0_i32, %c0_i32_0 : i32, i32
  }
  func.func @transform_6(%arg0: i32) -> (i32, i32) {
    %c0_i32 = arith.constant 0 : i32
    %c0_i32_0 = arith.constant 0 : i32
    %c0_i32_1 = arith.constant 0 : i32
    return %c0_i32, %c0_i32_0 : i32, i32
  }
  func.func @transform_7(%arg0: i32) -> (i32, i32) {
    %c0_i32 = arith.constant 0 : i32
    %c0_i32_0 = arith.constant 0 : i32
    %c0_i32_1 = arith.constant 0 : i32
    return %c0_i32, %c0_i32_0 : i32, i32
  }
  func.func @transform_8(%arg0: i32) -> (i32, i32) {
    %c0_i32 = arith.constant 0 : i32
    %c0_i32_0 = arith.constant 0 : i32
    %c0_i32_1 = arith.constant 0 : i32
    return %c0_i32, %c0_i32_0 : i32, i32
  }
  func.func @transform_9(%arg0: i32) -> (i32, i32) {
    %c0_i32 = arith.constant 0 : i32
    %c0_i32_0 = arith.constant 0 : i32
    return %arg0, %c0_i32 : i32, i32
  }
}

</mosaic_0001>

<bundles_post_ra>
// kernel: tpu_custom_call.1
= control target key start
LH: loop header
LB: loop body
LE: loop exit
PB: predicated region body
PF: predicated region fallthrough
CT: control target
= control target key end

     0   :  { %14 = vsyncpa [#allocation3], 0  ;;  %s1058_s0 = inlined_call_operand.hbm [shape: f32[8,8], index: 0, kind: input, shape index: {}]   ;;  %s1059_s1 = inlined_call_operand.hbm [shape: f32[8,128], index: 1, kind: input, shape index: {}]   ;;  %s1060_s2 = inlined_call_operand.vmem [shape: f32[1,128], index: 2, kind: input, shape index: {}]   ;;  %s1061_s3 = inlined_call_operand.hbm [shape: f32[128,128], index: 3, kind: input, shape index: {}]   ;;  %s1062_s4 = inlined_call_operand.vmem [shape: f32[1,128], index: 4, kind: input, shape index: {}]   ;;  %s1063_s5 = inlined_call_operand.hbm [shape: f32[128,128], index: 5, kind: input, shape index: {}]   ;;  %s1064_s6 = inlined_call_operand.vmem [shape: f32[1,128], index: 6, kind: input, shape index: {}]   ;;  %s1065_s7 = inlined_call_operand.hbm [shape: f32[128,128], index: 7, kind: input, shape index: {}]   ;;  %s1066_s8 = inlined_call_operand.vmem [shape: f32[1,128], index: 8, kind: input, shape index: {}]   ;;  %s1067_s9 = inlined_call_operand.hbm [shape: f32[8,128], index: 9, kind: output, shape index: {}]  }
   0x1   :  { %15 = vsyncpa [#allocation6], 0 }
   0x2   :  { %16 = vsyncpa [#allocation9], 0 }
   0x3   :  { %17 = vsyncpa [#allocation4], 0  ;;  %s871_s30 = smov [#allocation5]   ;;  %s731_s13 = scalar_lea.hbm %s1059_s1, 128 }
   0x4   :  { %s34_s10 = sshll.u32 %s871_s30, 4  ;;  %p732_p0 = scmp.ne.s32.totalorder %s1059_s1, %s731_s13  ;;  %s35_s10 = int_to_ptr.vmem [resolvable:$true] %s34_s10 }
   0x5   :  { %p735_p1 = scmp.lt.u32.totalorder %s731_s13, %s1059_s1 }
   0x7   :  { %p737_p2 = pnand %p735_p1, %p732_p0 }
   0x9   :  { %740 = shalt.err (!%p737_p2)
}
   0xa   :  { %s741_s18 = scalar_lea.vmem %s35_s10, 128  ;;  %p746_p4 = scmp.lt.s32.totalorder %s35_s10, %s35_s10 }
   0xb   :  { %p742_p3 = scmp.ne.s32.totalorder %s35_s10, %s741_s18  ;;  %p747_p5 = scmp.lt.s32.totalorder %s741_s18, %s741_s18 }
   0xd   :  { %p748_p6 = por %p747_p5, %p746_p4 }
   0xf   :  { %p749_p7 = pnand %p748_p6, %p742_p3 }
  0x11   :  { %752 = shalt.err (!%p749_p7)
}
  0x12   :  { %37 = dma.hbm_to_vmem [thread:$0]  %s1059_s1, 128, %s35_s10, [#allocation6]  }
  0x13   :  { %s872_s21 = smov [#allocation8]   ;;  %s873_s23 = smov [#allocation2]  }
  0x14   :  { %s59_s22 = sshll.u32 %s872_s21, 4  ;;  %s24_s24 = sshll.u32 %s873_s23, 4  ;;  %s60_s22 = int_to_ptr.vmem [resolvable:$true] %s59_s22  ;;  %s25_s24 = int_to_ptr.vmem [resolvable:$true] %s24_s24 }
  0x15   :  { %s753_s27 = scalar_lea.hbm %s1063_s5, 2048 }
  0x16   :  { %p754_p8 = scmp.ne.s32.totalorder %s1063_s5, %s753_s27  ;;  %p757_p9 = scmp.lt.u32.totalorder %s753_s27, %s1063_s5 }
  0x18   :  { %p759_p10 = pnand %p757_p9, %p754_p8 }
  0x1a   :  { %762 = shalt.err (!%p759_p10)
}
  0x1b   :  { %s763_s1 = scalar_lea.vmem %s60_s22, 2048  ;;  %p768_p12 = scmp.lt.s32.totalorder %s60_s22, %s60_s22 }
  0x1c   :  { %p764_p11 = scmp.ne.s32.totalorder %s60_s22, %s763_s1  ;;  %p769_p13 = scmp.lt.s32.totalorder %s763_s1, %s763_s1 }
  0x1e   :  { %p770_p0 = por %p769_p13, %p768_p12 }
  0x20   :  { %p771_p1 = pnand %p770_p0, %p764_p11 }
  0x22   :  { %774 = shalt.err (!%p771_p1)
}
  0x23   :  { %s874_s10 = smov 128   ;;  %s875_s12 = smov 8  }
  0x24   :  { %65 = dma.hbm_to_vmem [thread:$0]  %s1063_s5, 2048, %s60_s22, [#allocation9], %s874_s10, %s874_s10, %s875_s12  }
  0x25   :  { %s775_s17 = scalar_lea.hbm %s1058_s0, 128 }
  0x26   :  { %p776_p2 = scmp.ne.s32.totalorder %s1058_s0, %s775_s17  ;;  %p779_p3 = scmp.lt.u32.totalorder %s775_s17, %s1058_s0 }
  0x28   :  { %p781_p4 = pnand %p779_p3, %p776_p2 }
  0x2a   :  { %784 = shalt.err (!%p781_p4)
}
  0x2b   :  { %s785_s23 = scalar_lea.vmem %s25_s24, 128  ;;  %p790_p6 = scmp.lt.s32.totalorder %s25_s24, %s25_s24 }
  0x2c   :  { %p786_p5 = scmp.ne.s32.totalorder %s25_s24, %s785_s23  ;;  %p791_p7 = scmp.lt.s32.totalorder %s785_s23, %s785_s23 }
  0x2e   :  { %p792_p8 = por %p791_p7, %p790_p6 }
  0x30   :  { %p793_p9 = pnand %p792_p8, %p786_p5 }
  0x32   :  { %796 = shalt.err (!%p793_p9)
}
  0x33   :  { %27 = dma.hbm_to_vmem [thread:$0]  %s1058_s0, 128, %s25_s24, [#allocation3]  }
  0x34   :  { %s876_s25 = smov [#allocation7]   ;;  %s877_s27 = smov [#allocation10]  }
  0x35   :  { %s45_s26 = sshll.u32 %s876_s25, 4  ;;  %s73_s28 = sshll.u32 %s877_s27, 4  ;;  %s46_s26 = int_to_ptr.vmem [resolvable:$true] %s45_s26  ;;  %s74_s28 = int_to_ptr.vmem [resolvable:$true] %s73_s28 }
  0x36   :  { %s797_s11 = scalar_lea.hbm %s1061_s3, 2048 }
  0x37   :  { %p798_p10 = scmp.ne.s32.totalorder %s1061_s3, %s797_s11  ;;  %p801_p11 = scmp.lt.u32.totalorder %s797_s11, %s1061_s3 }
  0x39   :  { %p803_p12 = pnand %p801_p11, %p798_p10 }
  0x3b   :  { %806 = shalt.err (!%p803_p12)
}
  0x3c   :  { %s807_s0 = scalar_lea.vmem %s46_s26, 2048  ;;  %p812_p0 = scmp.lt.s32.totalorder %s46_s26, %s46_s26 }
  0x3d   :  { %p808_p13 = scmp.ne.s32.totalorder %s46_s26, %s807_s0  ;;  %p813_p1 = scmp.lt.s32.totalorder %s807_s0, %s807_s0 }
  0x3f   :  { %p814_p2 = por %p813_p1, %p812_p0 }
  0x41   :  { %p815_p3 = pnand %p814_p2, %p808_p13 }
  0x43   :  { %818 = shalt.err (!%p815_p3)
}
  0x44   :  { %51 = dma.hbm_to_vmem [thread:$0]  %s1061_s3, 2048, %s46_s26, [#allocation6], %s874_s10, %s874_s10, %s875_s12  }
  0x45   :  { %s819_s19 = scalar_lea.hbm %s1065_s7, 2048 }
  0x46   :  { %p820_p4 = scmp.ne.s32.totalorder %s1065_s7, %s819_s19  ;;  %p823_p5 = scmp.lt.u32.totalorder %s819_s19, %s1065_s7 }
  0x48   :  { %p825_p6 = pnand %p823_p5, %p820_p4 }
  0x4a   :  { %828 = shalt.err (!%p825_p6)
}
  0x4b   :  { %s829_s22 = scalar_lea.vmem %s74_s28, 2048  ;;  %p834_p8 = scmp.lt.s32.totalorder %s74_s28, %s74_s28 }
  0x4c   :  { %p830_p7 = scmp.ne.s32.totalorder %s74_s28, %s829_s22  ;;  %p835_p9 = scmp.lt.s32.totalorder %s829_s22, %s829_s22 }
  0x4e   :  { %p836_p10 = por %p835_p9, %p834_p8 }
  0x50   :  { %p837_p11 = pnand %p836_p10, %p830_p7 }
  0x52   :  { %840 = shalt.err (!%p837_p11)
}
  0x53   :  { %79 = dma.hbm_to_vmem [thread:$0]  %s1065_s7, 2048, %s74_s28, [#allocation9], %s874_s10, %s874_s10, %s875_s12  }
  0x54   :  { %863 = dma.done.wait [#allocation3], 128  }
  0x55   :  { %864 = vsyncadd [#allocation3], 4294967168 }
  0x56   :  { %865 = dma.done.wait [#allocation6], 2176  }
  0x57   :  { %866 = vsyncadd [#allocation6], 4294965120 }
  0x58   :  { %867 = dma.done.wait [#allocation9], 4096  }
  0x59   :  { %868 = vsyncadd [#allocation9], 4294963200  ;;  %v878_v0 = vmov 0.0   ;;  %vm879_vm0 = vmmov 0   ;;  %v880_v1 = vmov 0.0|0.0   ;;  %vm109_vm1 = vcmask 64512  }
  0x5a   :  { %538 = vmatprep.subr.mxu0 %v878_v0  ;;  %540 = vmatprep.mubr.msk.f32.mxu0 %vm879_vm0, %v878_v0  ;;  %v102_v2 = vld [vmem:[#allocation5] sm:$0xff]  ;;  %v97_v3 = vld [vmem:[#allocation2] sm:$0xff]  ;;  %v184_v4 = vld [vmem:[#allocation7] sm:$0xff]  ;;  %s881_s29 = smov [#allocation11]  }
  0x5b   :  { %648 = vmatprep.subr.bf16.mxu1 %v880_v1  ;;  %575 = vmatprep.mubr.msk.f32.mxu1 %vm879_vm0, %v878_v0  ;;  %v185_v5 = vld [vmem:[#allocation7 + $0x8] sm:$0xff]  ;;  %v186_v6 = vld [vmem:[#allocation7 + $0x10] sm:$0xff]  ;;  %v187_v7 = vld [vmem:[#allocation7 + $0x18] sm:$0xff]  ;;  %s469_s30 = sshll.u32 %s881_s29, 4  ;;  %s470_s30 = int_to_ptr.vmem [resolvable:$true] %s469_s30 }
  0x5c   :  { %539 = vmatpush3.msra.mxu0 %v102_v2  ;;  %v649_v8 = vpack.c.bf16 %v185_v5, %v184_v4  ;;  %v652_v9 = vpack.c.bf16 %v187_v7, %v186_v6  ;;  %v188_v10 = vld [vmem:[#allocation7 + $0x20] sm:$0xff]  ;;  %v189_v11 = vld [vmem:[#allocation7 + $0x28] sm:$0xff]  ;;  %v190_v13 = vld [vmem:[#allocation7 + $0x30] sm:$0xff]  ;;  %s841_s11 = scalar_lea.vmem %s470_s30, 128  ;;  %p846_p13 = scmp.lt.s32.totalorder %s470_s30, %s470_s30 }
  0x5d   :  { %541 = vmatmul.mubr.msk.f32.vlgmr.msra.gmra.mrb[0].mxu0 %vm109_vm1, %v97_v3  ;;  %672 = vmatprep.subr.bf16.mxu0 %v880_v1  ;;  %v655_v12 = vpack.c.bf16 %v189_v11, %v188_v10  ;;  %v191_v14 = vld [vmem:[#allocation7 + $0x38] sm:$0xff]  ;;  %v192_v16 = vld [vmem:[#allocation7 + $0x40] sm:$0xff]  ;;  %v193_v17 = vld [vmem:[#allocation7 + $0x48] sm:$0xff]  ;;  %p842_p12 = scmp.ne.s32.totalorder %s470_s30, %s841_s11  ;;  %p847_p0 = scmp.lt.s32.totalorder %s841_s11, %s841_s11 }
  0x5e   :  { %610 = vmatprep.mubr.msk.f32.mxu0 %vm879_vm0, %v878_v0  ;;  %650 = vmatpush3.bf16.msra.mxu1 %v649_v8  ;;  %v658_v15 = vpack.c.bf16 %v191_v14, %v190_v13  ;;  %v661_v18 = vpack.c.bf16 %v193_v17, %v192_v16  ;;  %v194_v19 = vld [vmem:[#allocation7 + $0x50] sm:$0xff]  ;;  %v195_v20 = vld [vmem:[#allocation7 + $0x58] sm:$0xff]  ;;  %v196_v22 = vld [vmem:[#allocation7 + $0x60] sm:$0xff] }
  0x5f   :  { %651 = vmatprep.subr.bf16.mxu1 %v880_v1  ;;  %v664_v21 = vpack.c.bf16 %v195_v20, %v194_v19  ;;  %v197_v23 = vld [vmem:[#allocation7 + $0x68] sm:$0xff]  ;;  %v198_v25 = vld [vmem:[#allocation7 + $0x70] sm:$0xff]  ;;  %v199_v26 = vld [vmem:[#allocation7 + $0x78] sm:$0xff]  ;;  %p848_p1 = por %p847_p0, %p846_p13 }
  0x60   :  { %v667_v24 = vpack.c.bf16 %v197_v23, %v196_v22  ;;  %v670_v27 = vpack.c.bf16 %v199_v26, %v198_v25  ;;  %v277_v28 = vld [vmem:[#allocation8] sm:$0xff]  ;;  %v278_v29 = vld [vmem:[#allocation8 + $0x8] sm:$0xff]  ;;  %v279_v30 = vld [vmem:[#allocation8 + $0x10] sm:$0xff] }
  0x61   :  { %v673_v31 = vpack.c.bf16 %v278_v29, %v277_v28  ;;  %v280_v32 = vld [vmem:[#allocation8 + $0x18] sm:$0xff]  ;;  %v281_v34 = vld [vmem:[#allocation8 + $0x20] sm:$0xff]  ;;  %v282_v35 = vld [vmem:[#allocation8 + $0x28] sm:$0xff]  ;;  %p849_p2 = pnand %p848_p1, %p842_p12 }
  0x62   :  { %653 = vmatpush3.bf16.msra.mxu1 %v652_v9  ;;  %v676_v33 = vpack.c.bf16 %v280_v32, %v279_v30  ;;  %v679_v36 = vpack.c.bf16 %v282_v35, %v281_v34  ;;  %v283_v37 = vld [vmem:[#allocation8 + $0x30] sm:$0xff]  ;;  %v284_v38 = vld [vmem:[#allocation8 + $0x38] sm:$0xff]  ;;  %v285_v40 = vld [vmem:[#allocation8 + $0x40] sm:$0xff] }
  0x63   :  { %654 = vmatprep.subr.bf16.mxu1 %v880_v1  ;;  %674 = vmatpush3.bf16.msra.mxu0 %v673_v31  ;;  %v682_v39 = vpack.c.bf16 %v284_v38, %v283_v37  ;;  %v286_v41 = vld [vmem:[#allocation8 + $0x48] sm:$0xff]  ;;  %v287_v43 = vld [vmem:[#allocation8 + $0x50] sm:$0xff]  ;;  %v288_v44 = vld [vmem:[#allocation8 + $0x58] sm:$0xff] }
  0x64   :  { %675 = vmatprep.subr.bf16.mxu0 %v880_v1  ;;  %v685_v42 = vpack.c.bf16 %v286_v41, %v285_v40  ;;  %v688_v45 = vpack.c.bf16 %v288_v44, %v287_v43  ;;  %v289_v46 = vld [vmem:[#allocation8 + $0x60] sm:$0xff]  ;;  %v290_v47 = vld [vmem:[#allocation8 + $0x68] sm:$0xff]  ;;  %v480_v49 = vld [vmem:[%s1060_s2] ss:$0 sm:$0xff] }
  0x65   :  { %v691_v48 = vpack.c.bf16 %v290_v47, %v289_v46  ;;  %v291_v54 = vld [vmem:[#allocation8 + $0x70] sm:$0xff]  ;;  %v292_v55 = vld [vmem:[#allocation8 + $0x78] sm:$0xff]  ;;  %v370_v57 = vld [vmem:[#allocation10] sm:$0xff] }
  0x66   :  { %656 = vmatpush3.bf16.msra.mxu1 %v655_v12  ;;  %v694_v56 = vpack.c.bf16 %v292_v55, %v291_v54  ;;  %v371_v58 = vld [vmem:[#allocation10 + $0x8] sm:$0xff]  ;;  %v372_v59 = vld [vmem:[#allocation10 + $0x10] sm:$0xff]  ;;  %v373_v61 = vld [vmem:[#allocation10 + $0x18] sm:$0xff] }
  0x67   :  { %657 = vmatprep.subr.bf16.mxu1 %v880_v1  ;;  %677 = vmatpush3.bf16.msra.mxu0 %v676_v33  ;;  %v697_v60 = vpack.c.bf16 %v371_v58, %v370_v57  ;;  %v700_v62 = vpack.c.bf16 %v373_v61, %v372_v59  ;;  %v374_v63 = vld [vmem:[#allocation10 + $0x20] sm:$0xff]  ;;  %v375_v2 = vld [vmem:[#allocation10 + $0x28] sm:$0xff]  ;;  %v377_v4 = vld [vmem:[#allocation10 + $0x38] sm:$0xff] }
  0x68   :  { %678 = vmatprep.subr.bf16.mxu0 %v880_v1  ;;  %v703_v3 = vpack.c.bf16 %v375_v2, %v374_v63  ;;  %v378_v6 = vld [vmem:[#allocation10 + $0x40] sm:$0xff]  ;;  %v379_v7 = vld [vmem:[#allocation10 + $0x48] sm:$0xff]  ;;  %v380_v9 = vld [vmem:[#allocation10 + $0x50] sm:$0xff] }
  0x69   :  { %v709_v8 = vpack.c.bf16 %v379_v7, %v378_v6  ;;  %v381_v10 = vld [vmem:[#allocation10 + $0x58] sm:$0xff]  ;;  %v382_v12 = vld [vmem:[#allocation10 + $0x60] sm:$0xff]  ;;  %v383_v13 = vld [vmem:[#allocation10 + $0x68] sm:$0xff] }
  0x6a   :  { %659 = vmatpush3.bf16.msra.mxu1 %v658_v15  ;;  %v712_v11 = vpack.c.bf16 %v381_v10, %v380_v9  ;;  %v715_v14 = vpack.c.bf16 %v383_v13, %v382_v12  ;;  %v482_v15 = vld [vmem:[%s1062_s4] ss:$0 sm:$0xff] }
  0x6b   :  { %660 = vmatprep.subr.bf16.mxu1 %v880_v1  ;;  %680 = vmatpush3.bf16.msra.mxu0 %v679_v36  ;;  %v384_v20 = vld [vmem:[#allocation10 + $0x70] sm:$0xff] }
  0x6c   :  { %681 = vmatprep.subr.bf16.mxu0 %v880_v1  ;;  %v483_v23 = vld [vmem:[%s1064_s6] ss:$0 sm:$0xff] }
  0x6e   :  { %662 = vmatpush3.bf16.msra.mxu1 %v661_v18 }
  0x6f   :  { %663 = vmatprep.subr.bf16.mxu1 %v880_v1  ;;  %683 = vmatpush3.bf16.msra.mxu0 %v682_v39 }
  0x70   :  { %684 = vmatprep.subr.bf16.mxu0 %v880_v1 }
  0x72   :  { %665 = vmatpush3.bf16.msra.mxu1 %v664_v21  ;;  %v385_v21 = vld [vmem:[#allocation10 + $0x78] sm:$0xff] }
  0x73   :  { %666 = vmatprep.subr.bf16.mxu1 %v880_v1  ;;  %686 = vmatpush3.bf16.msra.mxu0 %v685_v42  ;;  %v718_v22 = vpack.c.bf16 %v385_v21, %v384_v20 }
  0x74   :  { %687 = vmatprep.subr.bf16.mxu0 %v880_v1 }
  0x76   :  { %668 = vmatpush3.bf16.msra.mxu1 %v667_v24 }
  0x77   :  { %669 = vmatprep.subr.bf16.mxu1 %v880_v1  ;;  %689 = vmatpush3.bf16.msra.mxu0 %v688_v45 }
  0x78   :  { %690 = vmatprep.subr.bf16.mxu0 %v880_v1 }
  0x7a   :  { %671 = vmatpush3.bf16.msra.mxu1 %v670_v27  ;;  %v484_v27 = vld [vmem:[%s1066_s8] ss:$0 sm:$0xff] }
  0x7b   :  { %696 = vmatprep.subr.bf16.mxu1 %v880_v1  ;;  %692 = vmatpush3.bf16.msra.mxu0 %v691_v48 }
  0x7c   :  { %693 = vmatprep.subr.bf16.mxu0 %v880_v1 }
  0x7f   :  { %695 = vmatpush3.bf16.msra.mxu0 %v694_v56 }
 0x130   :  { %v179_v50 = vpop.f32.mrb[0].mxu0 }
 0x131   :  { %v180_v51 = vadd.f32 %v480_v49, %v179_v50  ;;  %v542_v52 = vpop.f32.mrb[1].mxu0 }
 0x133   :  { %v183_v53 = vmax.f32 %v180_v51, 0.0 }
 0x135   :  { %576 = vmatmul.mubr.f32.vlgmr.msra.gmra.mrb[0].mxu1 %v183_v53 }
 0x136   :  { %645 = vmatprep.mubr.msk.f32.mxu1 %vm879_vm0, %v878_v0  ;;  %698 = vmatpush3.bf16.msra.mxu1 %v697_v60  ;;  %v376_v0 = vld [vmem:[#allocation10 + $0x30] sm:$0xff] }
 0x137   :  { %699 = vmatprep.subr.bf16.mxu1 %v880_v1  ;;  %v706_v5 = vpack.c.bf16 %v377_v4, %v376_v0 }
 0x13a   :  { %701 = vmatpush3.bf16.msra.mxu1 %v700_v62 }
 0x13b   :  { %702 = vmatprep.subr.bf16.mxu1 %v880_v1 }
 0x13e   :  { %704 = vmatpush3.bf16.msra.mxu1 %v703_v3 }
 0x13f   :  { %705 = vmatprep.subr.bf16.mxu1 %v880_v1 }
 0x142   :  { %707 = vmatpush3.bf16.msra.mxu1 %v706_v5 }
 0x143   :  { %708 = vmatprep.subr.bf16.mxu1 %v880_v1 }
 0x146   :  { %710 = vmatpush3.bf16.msra.mxu1 %v709_v8 }
 0x147   :  { %711 = vmatprep.subr.bf16.mxu1 %v880_v1 }
 0x14a   :  { %713 = vmatpush3.bf16.msra.mxu1 %v712_v11 }
 0x14b   :  { %714 = vmatprep.subr.bf16.mxu1 %v880_v1 }
 0x14e   :  { %716 = vmatpush3.bf16.msra.mxu1 %v715_v14 }
 0x14f   :  { %717 = vmatprep.subr.bf16.mxu1 %v880_v1 }
 0x152   :  { %719 = vmatpush3.bf16.msra.mxu1 %v718_v22 }
 0x208   :  { %v272_v16 = vpop.f32.mrb[0].mxu1 }
 0x209   :  { %v273_v17 = vadd.f32 %v482_v15, %v272_v16  ;;  %v577_v18 = vpop.f32.mrb[1].mxu1 }
 0x20b   :  { %v276_v19 = vmax.f32 %v273_v17, 0.0 }
 0x20d   :  { %611 = vmatmul.mubr.f32.vlgmr.msra.gmra.mrb[2].mxu0 %v276_v19 }
 0x2e0   :  { %v365_v24 = vpop.f32.mrb[2].mxu0 }
 0x2e1   :  { %v366_v25 = vadd.f32 %v483_v23, %v365_v24  ;;  %v612_v1 = vpop.f32.mrb[3].mxu0 }
 0x2e3   :  { %v369_v26 = vmax.f32 %v366_v25, 0.0 }
 0x2e5   :  { %646 = vmatmul.mubr.f32.vlgmr.msra.gmra.mrb[2].mxu1 %v369_v26 }
 0x3b8   :  { %v458_v28 = vpop.f32.mrb[2].mxu1 }
 0x3b9   :  { %v459_v29 = vadd.f32 %v484_v27, %v458_v28  ;;  %v647_v30 = vpop.f32.mrb[3].mxu1 }
 0x3bb   :  { %462 = vst [vmem:[#allocation11] sm:$0xff] %v459_v29 }
 0x3bc   :  { %852 = shalt.err (!%p849_p2)
}
 0x3bd   :  { %s853_s13 = scalar_lea.hbm %s1067_s9, 128 }
 0x3be   :  { %p854_p3 = scmp.ne.s32.totalorder %s1067_s9, %s853_s13  ;;  %p857_p4 = scmp.lt.u32.totalorder %s853_s13, %s1067_s9 }
 0x3c0   :  { %p859_p5 = pnand %p857_p4, %p854_p3 }
 0x3c2   :  { %862 = shalt.err (!%p859_p5)
}
 0x3c3   :  { %472 = dma.vmem_to_hbm [thread:$0]  %s470_s30, 128, %s1067_s9, [#allocation4]  }
 0x3c4   :  { %869 = dma.done.wait [#allocation4], 128  }
 0x3c5   :  { %870 = vsyncadd [#allocation4], 4294967168 }
 0x3c6   :  { %476 = vsyncpa [#allocation3], 1 }
 0x3c7   :  { %477 = vsyncpa [#allocation6], 1 }
 0x3c8   :  { %478 = vsyncpa [#allocation9], 1 }
 0x3c9   :  { %479 = vsyncpa [#allocation4], 1 }

</bundles_post_ra>
